<compile_context>
chip_gen: v5e
topology: v5e:2x2
jax: 0.10.0
libtpu: 0.0.40
codegen_flags: <defaults>
</compile_context>

<pallas_src>
import functools

import jax
import jax.numpy as jnp
from jax.experimental import pallas as pl
from jax.experimental.pallas import tpu as pltpu

_LANES = 128
_SUBLANES = 8
_TARGET_BLOCK_BYTES = 1 << 20          # ~1 MiB per block (per input / output)
_VMEM_LIMIT_BYTES = 32 * 1024 * 1024   # safe on v5e (128 MiB) / v6e (128) / v7x (64)


def _round_up(a: int, b: int) -> int:
    return ((a + b - 1) // b) * b


def _scaled_loss_kernel(x_ref, y_ref, out_ref, *, fwd_fn, weight):
    """out = fwd_fn(x, y) * weight, fused elementwise on one lane-dense block."""
    loss = fwd_fn(x_ref[...], y_ref[...])
    out_ref[...] = (loss * jnp.asarray(weight, loss.dtype)).astype(out_ref.dtype)


class BaseLoss:
    """JAX/Pallas port of compresslab.loss.loss._baseLoss.

    NOTE: the fused kernel assumes `_forward` is strictly elementwise (same
    output shape as the inputs).  Reducing losses need their own kernel.
    """

    def __init__(self, weight: float = 1.0):
        self.weight = float(weight)

    # Abstract hook, exactly like the PyTorch module.
    def _forward(self, x, y):
        # TODO(synk): `_forward` is abstract in the original module; subclasses
        # must override it with the actual elementwise loss.
        raise NotImplementedError

    def forward(self, x, y):
        assert x.shape == y.shape and x.dtype == y.dtype
        orig_shape = x.shape
        n = x.size
        itemsize = jnp.dtype(x.dtype).itemsize

        # ---- lane-dense 2-D view (fast path: pure reshape, no HBM copy) ----
        pad = (-n) % _LANES
        if pad:
            # TODO(synk): rare non-128-divisible tail; pads only up to 127
            # elements but still costs one extra copy of the arrays.
            xf = jnp.pad(x.reshape(-1), (0, pad))
            yf = jnp.pad(y.reshape(-1), (0, pad))
        else:
            xf = x.reshape(-1)
            yf = y.reshape(-1)
        x2d = xf.reshape(-1, _LANES)
        y2d = yf.reshape(-1, _LANES)
        M = x2d.shape[0]

        # ---- tile size: as big as fits the VMEM target, aligned to packing ----
        packing = max(1, 4 // itemsize)          # f32:1, bf16:2, int8/fp8:4
        row_align = _SUBLANES * packing          # min sublane tile per dtype
        max_rows = max(row_align, _TARGET_BLOCK_BYTES // (_LANES * itemsize))
        tile_m = min(max_rows, _round_up(M, row_align))
        tile_m = _round_up(tile_m, row_align)

        grid = (pl.cdiv(M, tile_m),)
        blk = pl.BlockSpec((tile_m, _LANES), lambda i: (i, 0))

        kernel = functools.partial(
            _scaled_loss_kernel, fwd_fn=self._forward, weight=self.weight
        )

        cost = pl.CostEstimate(
            flops=2 * n,                       # fwd_fn (approx) + weight scale
            transcendentals=0,
            bytes_accessed=3 * n * itemsize,   # 2 inputs + 1 output
        )

        out2d = pl.pallas_call(
            kernel,
            out_shape=jax.ShapeDtypeStruct((M, _LANES), x.dtype),
            grid_spec=pltpu.PrefetchScalarGridSpec(
                num_scalar_prefetch=0,
                grid=grid,
                in_specs=[blk, blk],
                out_specs=blk,
            ),
            compiler_params=pltpu.CompilerParams(
                dimension_semantics=("parallel",),
                vmem_limit_bytes=_VMEM_LIMIT_BYTES,
            ),
            cost_estimate=cost,
        )(x2d, y2d)

        if pad:
            return out2d.reshape(-1)[:n].reshape(orig_shape)
        return out2d.reshape(orig_shape)

    __call__ = forward


class _DemoDiffLoss(BaseLoss):
    """Minimal concrete subclass used ONLY to exercise the kernel in __main__."""

    def _forward(self, x, y):
        return x - y


if __name__ == "__main__":
    key = jax.random.PRNGKey(0)
    kx, ky = jax.random.split(key)

    # NCHW inputs, small shapes: batch=2, channels=4, spatial=16x16.
    x = jax.random.normal(kx, (2, 4, 16, 16), dtype=jnp.float32)
    y = jax.random.normal(ky, (2, 4, 16, 16), dtype=jnp.float32)

    weight = 0.5
    loss_mod = _DemoDiffLoss(weight=weight)

    out = loss_mod(x, y)
    out = jax.block_until_ready(out)

    # Pure-JAX reference: forward(x, y) = _forward(x, y) * weight
    ref = (x - y) * weight
    assert out.shape == ref.shape and out.dtype == ref.dtype
    assert jnp.allclose(out, ref, atol=1e-6, rtol=1e-6)

    print("KERNEL_OK")
</pallas_src>

<mosaic_0001>
module attributes {stable_mosaic.version = 11 : i64} {
  func.func @_scaled_loss_kernel(%arg0: i32, %arg1: memref<16x128xf32, #tpu.memory_space<vmem>>, %arg2: memref<16x128xf32, #tpu.memory_space<vmem>>, %arg3: memref<16x128xf32, #tpu.memory_space<vmem>>) attributes {dimension_semantics = [#tpu.dimension_semantics<parallel>], iteration_bounds = array<i64: 1>, scalar_prefetch = 0 : i64, scratch_operands = 0 : i64, tpu.core_type = #tpu.core_type<tc>, window_params = [{transform_indices = @transform_0, window_bounds = array<i64: 16, 128>}, {transform_indices = @transform_1, window_bounds = array<i64: 16, 128>}, {transform_indices = @transform_2, window_bounds = array<i64: 16, 128>}]} {
    %c0 = arith.constant 0 : index
    %c0_0 = arith.constant 0 : index
    %0 = vector.load %arg1[%c0, %c0_0] : memref<16x128xf32, #tpu.memory_space<vmem>>, vector<16x128xf32>
    %c0_1 = arith.constant 0 : index
    %c0_2 = arith.constant 0 : index
    %1 = vector.load %arg2[%c0_1, %c0_2] : memref<16x128xf32, #tpu.memory_space<vmem>>, vector<16x128xf32>
    %2 = arith.subf %0, %1 : vector<16x128xf32>
    %cst = arith.constant 5.000000e-01 : f32
    %3 = vector.broadcast %cst : f32 to vector<16x128xf32>
    %4 = arith.mulf %2, %3 : vector<16x128xf32>
    %c0_3 = arith.constant 0 : index
    %c0_4 = arith.constant 0 : index
    %5 = vector.load %arg3[%c0_3, %c0_4] : memref<16x128xf32, #tpu.memory_space<vmem>>, vector<16x128xf32>
    tpu.vector_store %arg3[%c0_3, %c0_4], %4 {strides = array<i32>} : memref<16x128xf32, #tpu.memory_space<vmem>>, vector<16x128xf32>,
    return
  }
  func.func @transform_0(%arg0: i32) -> (i32, i32) {
    %c0_i32 = arith.constant 0 : i32
    %c0_i32_0 = arith.constant 0 : i32
    return %arg0, %c0_i32 : i32, i32
  }
  func.func @transform_1(%arg0: i32) -> (i32, i32) {
    %c0_i32 = arith.constant 0 : i32
    %c0_i32_0 = arith.constant 0 : i32
    return %arg0, %c0_i32 : i32, i32
  }
  func.func @transform_2(%arg0: i32) -> (i32, i32) {
    %c0_i32 = arith.constant 0 : i32
    %c0_i32_0 = arith.constant 0 : i32
    return %arg0, %c0_i32 : i32, i32
  }
}

</mosaic_0001>

<bundles_post_ra>
// kernel: tpu_custom_call.1
= control target key start
LH: loop header
LB: loop body
LE: loop exit
PB: predicated region body
PF: predicated region fallthrough
CT: control target
= control target key end

     0   :  { %7 = vsyncpa [#allocation3], 0  ;;  %s195_s0 = inlined_call_operand.hbm [shape: f32[16,128], index: 0, kind: input, shape index: {}]   ;;  %s196_s1 = inlined_call_operand.hbm [shape: f32[16,128], index: 1, kind: input, shape index: {}]   ;;  %s197_s2 = inlined_call_operand.hbm [shape: f32[16,128], index: 2, kind: output, shape index: {}]  }
   0x1   :  { %8 = vsyncpa [#allocation6], 0 }
   0x2   :  { %9 = vsyncpa [#allocation4], 0  ;;  %s14_s11 = sshll.u32 %s195_s0, 4  ;;  %s157_s12 = smov [#allocation2]   ;;  %s15_s11 = int_to_ptr.hbm [resolvable:$true] %s14_s11 }
   0x3   :  { %s16_s13 = sshll.u32 %s157_s12, 4  ;;  %s27_s16 = sshll.u32 %s196_s1, 4  ;;  %s17_s13 = int_to_ptr.vmem [resolvable:$true] %s16_s13  ;;  %s28_s16 = int_to_ptr.hbm [resolvable:$true] %s27_s16 }
   0x4   :  { %s158_s17 = smov 128   ;;  %s159_s18 = smov 8  }
   0x5   :  { %22 = dma.hbm_to_vmem [thread:$0]  %s15_s11, 256, %s17_s13, [#allocation3], %s158_s17, %s158_s17, %s159_s18  }
   0x6   :  { %s160_s19 = smov [#allocation5]  }
   0x7   :  { %s29_s20 = sshll.u32 %s160_s19, 4  ;;  %s30_s20 = int_to_ptr.vmem [resolvable:$true] %s29_s20 }
   0x8   :  { %35 = dma.hbm_to_vmem [thread:$0]  %s28_s16, 256, %s30_s20, [#allocation6], %s158_s17, %s158_s17, %s159_s18  }
   0x9   :  { %151 = dma.done.wait [#allocation3], 256  }
   0xa   :  { %152 = vsyncadd [#allocation3], 4294967040 }
   0xb   :  { %153 = dma.done.wait [#allocation6], 256  }
   0xc   :  { %154 = vsyncadd [#allocation6], 4294967040  ;;  %v44_v0 = vld [vmem:[#allocation2] sm:$0xff]  ;;  %v46_v1 = vld [vmem:[#allocation5] sm:$0xff]  ;;  %s161_s0 = smov [#allocation7]   ;;  %s60_s23 = sshll.u32 %s197_s2, 4  ;;  %s61_s23 = int_to_ptr.hbm [resolvable:$true] %s60_s23 }
   0xd   :  { %v45_v2 = vld [vmem:[#allocation2 + $0x8] sm:$0xff]  ;;  %v48_v3 = vsub.f32 %v44_v0, %v46_v1  ;;  %v47_v4 = vld [vmem:[#allocation5 + $0x8] sm:$0xff]  ;;  %s58_s1 = sshll.u32 %s161_s0, 4  ;;  %s59_s1 = int_to_ptr.vmem [resolvable:$true] %s58_s1 }
   0xe   :  { %v49_v5 = vsub.f32 %v45_v2, %v47_v4 }
   0xf   :  { %v50_v6 = vmul.f32 0.5, %v48_v3 }
  0x10   :  { %v51_v7 = vmul.f32 0.5, %v49_v5 }
  0x11   :  { %52 = vst [vmem:[#allocation7] sm:$0xff] %v50_v6 }
  0x12   :  { %53 = vst [vmem:[#allocation7 + $0x8] sm:$0xff] %v51_v7 }
  0x13   :  { %66 = dma.vmem_to_hbm [thread:$0]  %s59_s1, 256, %s61_s23, [#allocation4], %s158_s17, %s158_s17, %s159_s18  }
  0x14   :  { %155 = dma.done.wait [#allocation4], 256  }
  0x15   :  { %156 = vsyncadd [#allocation4], 4294967040 }
  0x16   :  { %71 = vsyncpa [#allocation3], 1 }
  0x17   :  { %72 = vsyncpa [#allocation6], 1 }
  0x18   :  { %73 = vsyncpa [#allocation4], 1 }

</bundles_post_ra>
